<compile_context>
chip_gen: v5e
topology: v5e:2x2
jax: 0.10.0
libtpu: 0.0.40
codegen_flags: <defaults>
</compile_context>

<pallas_src>
import functools
import math

import jax
import jax.numpy as jnp
from jax import lax
from jax.experimental import pallas as pl
from jax.experimental.pallas import tpu as pltpu


def _round_up(v, m):
    return (v + m - 1) // m * m


def _one_conv_kernel(xp_ref, w_ref, b_ref, o_ref, *, W, negative_slope, cast_early):
    """One image per grid step.

    xp_ref: (1, G0, Lp)       zero-halo-padded slab, float32
                              lanes = [top halo (W) | image (H*W) | bottom halo/pad]
    w_ref : (G, 9*G0)         tap-stacked weights, compute dtype
    b_ref : (G, 1)            bias, float32
    o_ref : (1, G0+G, Lo)     concat(x, lrelu(conv3x3(x))), float32, Lo % 128 == 0
    """
    G0 = xp_ref.shape[1]
    Lp = xp_ref.shape[2]
    G = w_ref.shape[0]
    Lo = o_ref.shape[2]
    cdtype = w_ref.dtype

    xp = xp_ref[0]                                   # (G0, Lp) float32

    # Center tap (dh=1, dw=1): rolling by -W brings the original (unpadded) image
    # to lanes [0, Lo).  Kept in f32 so the identity half of the concat is exact.
    x_center = pltpu.roll(xp, shift=Lp - W, axis=1)[:, :Lo]
    o_ref[0, 0:G0, :] = x_center.astype(o_ref.dtype)

    # Matmul-operand dtype handling (single cast of the slab when cast_early).
    xpc = xp.astype(cdtype) if (cast_early and cdtype != xp.dtype) else xp

    # Horizontal boundary masks only; vertical boundaries are handled by the halo.
    w_id = lax.broadcasted_iota(jnp.int32, (1, Lo), 1) % W
    not_left = w_id >= 1                             # dw == 0 taps
    not_right = w_id <= W - 2                        # dw == 2 taps

    taps = []
    for dh in range(3):
        for dw in range(3):
            if dh == 1 and dw == 1:
                taps.append(x_center if x_center.dtype == cdtype
                            else x_center.astype(cdtype))
                continue
            offset = (dh - 1) * W + (dw - 1)         # neighbour offset in lanes
            shift = (-(W + offset)) % Lp
            xs = xpc if shift == 0 else pltpu.roll(xpc, shift=shift, axis=1)
            xs = xs[:, :Lo]
            if dw == 0:
                xs = jnp.where(not_left, xs, jnp.zeros_like(xs))
            elif dw == 2:
                xs = jnp.where(not_right, xs, jnp.zeros_like(xs))
            taps.append(xs)

    # Stack the 9 taps on the sublane axis -> ONE (G, 9*G0) x (9*G0, Lo) MXU call
    # with f32 accumulation (replaces 9 thin matmuls + 8 full VPU accumulator adds).
    x9 = jnp.concatenate(taps, axis=0)
    if x9.dtype != cdtype:
        x9 = x9.astype(cdtype)
    y = jnp.dot(w_ref[...], x9, preferred_element_type=jnp.float32)

    y = y + b_ref[...]                               # (G, Lo) + (G, 1)
    y = jnp.where(y >= 0.0, y, negative_slope * y)   # LeakyReLU(0.1), f32
    o_ref[0, G0:G0 + G, :] = y.astype(o_ref.dtype)


def one_conv(x, w, b, *, negative_slope=0.1, compute_dtype=jnp.float32,
             cast_taps_early=True):
    """Pallas TPU forward of iPASSR `one_conv`: cat([x, lrelu(conv3x3(x))], dim=1).

    x: (N, G0, H, W) float32 (NCHW);  w: (G, G0, 3, 3) float32;  b: (G,) float32
    -> (N, G0 + G, H, W) float32
    """
    N, G0, H, W = x.shape
    G = w.shape[0]
    assert w.shape == (G, G0, 3, 3) and b.shape == (G,)
    L = H * W
    Lo = _round_up(L, 128)                      # lane-dense output stores
    Lp = _round_up(max((H + 2) * W, Lo), 128)   # padded slab length (>=1 halo row/side)

    # Channel-major slab per image, zero halo row above + (>= one) below; pure
    # pad + reshape, no transposes, no im2col.
    xf = x.reshape(N, G0, L).astype(jnp.float32)
    xp = jnp.pad(xf, ((0, 0), (0, 0), (W, Lp - L - W)))

    # Tap-stacked, lane-dense weights: wk[g, t*G0 + c] = w[g, c, dh, dw], t = dh*3+dw.
    wk = jnp.transpose(w, (0, 2, 3, 1)).reshape(G, 9 * G0).astype(compute_dtype)
    b2 = b.reshape(G, 1).astype(jnp.float32)

    # VMEM budget from actual usage (review item): double-buffered blocks + weights
    # + in-kernel temporaries, capped at the per-generation VMEM capacity.
    cb = jnp.dtype(compute_dtype).itemsize
    vmem_bytes = (
        2 * G0 * Lp * 4                       # input blocks (double-buffered)
        + 2 * (G0 + G) * Lo * 4               # output blocks (double-buffered)
        + 2 * (G * 9 * G0 * cb + G * 4)       # weights + bias
        + 2 * 9 * G0 * Lo * cb                # stacked operand + live rolled taps
        + G0 * Lo * 4                         # f32 center-tap copy
        + 3 * G * Lo * 4                      # matmul result / epilogue temps
        + (2 << 20)                           # iota / masks / misc headroom
    )
    try:
        cap = int(pltpu.get_tpu_info().vmem_capacity_bytes)
    except Exception:
        cap = 64 * 2 ** 20                    # v7x per-TC capacity: safe lower bound
    vmem_limit = int(min(max(vmem_bytes, 32 * 2 ** 20), cap - (4 << 20)))

    kernel = functools.partial(_one_conv_kernel, W=W,
                               negative_slope=negative_slope,
                               cast_early=cast_taps_early)
    out = pl.pallas_call(
        kernel,
        out_shape=jax.ShapeDtypeStruct((N, G0 + G, Lo), jnp.float32),
        grid_spec=pltpu.PrefetchScalarGridSpec(
            num_scalar_prefetch=0,
            grid=(N,),
            in_specs=[
                pl.BlockSpec((1, G0, Lp), lambda n: (n, 0, 0)),
                pl.BlockSpec((G, 9 * G0), lambda n: (0, 0)),
                pl.BlockSpec((G, 1), lambda n: (0, 0)),
            ],
            out_specs=pl.BlockSpec((1, G0 + G, Lo), lambda n: (n, 0, 0)),
        ),
        compiler_params=pltpu.CompilerParams(
            dimension_semantics=("parallel",),
            vmem_limit_bytes=vmem_limit,
        ),
    )(xp, wk, b2)
    if Lo != L:
        out = out[:, :, :L]
    return out.reshape(N, G0 + G, H, W)


def one_conv_ref(x, w, b, negative_slope=0.1):
    """Pure-JAX reference (matches the PyTorch module in f32)."""
    y = lax.conv_general_dilated(
        x, w, window_strides=(1, 1), padding=((1, 1), (1, 1)),
        dimension_numbers=("NCHW", "OIHW", "NCHW"),
        precision=lax.Precision.HIGHEST)
    y = y + b[None, :, None, None]
    y = jnp.where(y >= 0.0, y, negative_slope * y)
    return jnp.concatenate([x, y], axis=1)


if __name__ == "__main__":
    N, G0, G, H, W = 2, 8, 16, 16, 16          # small shapes consistent with one_conv

    key = jax.random.PRNGKey(0)
    kx, kw, kb = jax.random.split(key, 3)
    x = jax.random.uniform(kx, (N, G0, H, W), jnp.float32)
    w = jax.random.normal(kw, (G, G0, 3, 3), jnp.float32) / math.sqrt(G0 * 9)
    b = 0.01 * jax.random.normal(kb, (G,), jnp.float32)

    fwd = jax.jit(one_conv)
    out = fwd(x, w, b)
    jax.block_until_ready(out)

    assert out.shape == (N, G0 + G, H, W)
    assert bool(jnp.all(jnp.isfinite(out)))

    ref = one_conv_ref(x, w, b)
    err = float(jnp.max(jnp.abs(out - ref)))
    assert err < 1e-2, f"f32 kernel mismatch vs reference: {err}"
    assert bool(jnp.array_equal(out[:, :G0], x))       # exact identity-concat part

    # Spatial size whose H*W is not a multiple of 128 exercises the lane-padding path.
    H2 = W2 = 12
    x2 = jax.random.uniform(kx, (N, G0, H2, W2), jnp.float32)
    out2 = jax.jit(one_conv)(x2, w, b)
    jax.block_until_ready(out2)
    err2 = float(jnp.max(jnp.abs(out2 - one_conv_ref(x2, w, b))))
    assert err2 < 1e-2, f"lane-padded kernel mismatch vs reference: {err2}"

    # Optional bf16-MXU operand path (f32 accumulation / epilogue).
    fwd_bf16 = jax.jit(functools.partial(one_conv, compute_dtype=jnp.bfloat16))
    out_bf16 = fwd_bf16(x, w, b)
    jax.block_until_ready(out_bf16)
    err_bf16 = float(jnp.max(jnp.abs(out_bf16 - ref)))
    assert err_bf16 < 5e-2, f"bf16 kernel mismatch vs reference: {err_bf16}"

    print("KERNEL_OK")
</pallas_src>

<mosaic_0001>
module attributes {stable_mosaic.version = 11 : i64} {
  func.func @_one_conv_kernel(%arg0: i32, %arg1: memref<1x8x384xf32, #tpu.memory_space<vmem>>, %arg2: memref<16x72xf32, #tpu.memory_space<vmem>>, %arg3: memref<16x1xf32, #tpu.memory_space<vmem>>, %arg4: memref<1x24x256xf32, #tpu.memory_space<vmem>>) attributes {dimension_semantics = [#tpu.dimension_semantics<parallel>], iteration_bounds = array<i64: 2>, scalar_prefetch = 0 : i64, scratch_operands = 0 : i64, tpu.core_type = #tpu.core_type<tc>, window_params = [{transform_indices = @transform_0, window_bounds = array<i64: 1, 8, 384>}, {pipeline_mode = #tpu.pipeline_mode<synchronous>, transform_indices = @transform_1, window_bounds = array<i64: 16, 72>}, {pipeline_mode = #tpu.pipeline_mode<synchronous>, transform_indices = @transform_2, window_bounds = array<i64: 16, 1>}, {transform_indices = @transform_3, window_bounds = array<i64: 1, 24, 256>}]} {
    %c0 = arith.constant 0 : index
    %c0_0 = arith.constant 0 : index
    %c0_1 = arith.constant 0 : index
    %0 = vector.load %arg1[%c0, %c0_0, %c0_1] : memref<1x8x384xf32, #tpu.memory_space<vmem>>, vector<1x8x384xf32>
    %1 = vector.shape_cast %0 : vector<1x8x384xf32> to vector<8x384xf32>
    %c368_i32 = arith.constant 368 : i32
    %2 = tpu.dynamic_rotate %1 by %c368_i32 dim 1 : vector<8x384xf32>, i32 -> vector<8x384xf32>
    %3 = vector.extract_strided_slice %2 {offsets = [0, 0], sizes = [8, 256], strides = [1, 1]} : vector<8x384xf32> to vector<8x256xf32>
    %c0_2 = arith.constant 0 : index
    %c0_3 = arith.constant 0 : index
    %c0_4 = arith.constant 0 : index
    %4 = vector.load %arg4[%c0_2, %c0_3, %c0_4] : memref<1x24x256xf32, #tpu.memory_space<vmem>>, vector<1x8x256xf32>
    %5 = vector.shape_cast %4 : vector<1x8x256xf32> to vector<8x256xf32>
    %6 = vector.shape_cast %3 : vector<8x256xf32> to vector<1x8x256xf32>
    tpu.vector_store %arg4[%c0_2, %c0_3, %c0_4], %6 {strides = array<i32>} : memref<1x24x256xf32, #tpu.memory_space<vmem>>, vector<1x8x256xf32>,
    %7 = tpu.iota {dimensions = array<i32: 1>} : vector<1x256xi32>
    %c16_i32 = arith.constant 16 : i32
    %c0_i32 = arith.constant 0 : i32
    %8 = arith.cmpi eq, %c16_i32, %c0_i32 : i32
    %c1_i32 = arith.constant 1 : i32
    %9 = arith.select %8, %c1_i32, %c16_i32 : i32
    %10 = vector.broadcast %9 : i32 to vector<1x256xi32>
    %11 = arith.remsi %7, %10 : vector<1x256xi32>
    %c0_i32_5 = arith.constant 0 : i32
    %12 = vector.broadcast %c0_i32_5 : i32 to vector<1x256xi32>
    %13 = arith.cmpi ne, %11, %12 : vector<1x256xi32>
    %c0_i32_6 = arith.constant 0 : i32
    %14 = vector.broadcast %c0_i32_6 : i32 to vector<1x256xi32>
    %15 = arith.cmpi slt, %11, %14 : vector<1x256xi32>
    %c0_i32_7 = arith.constant 0 : i32
    %16 = arith.cmpi slt, %9, %c0_i32_7 : i32
    %17 = vector.broadcast %16 : i1 to vector<1x256xi1>
    %18 = vector.broadcast %17 : vector<1x256xi1> to vector<1x256xi1>
    %19 = arith.xori %15, %18 : vector<1x256xi1>
    %20 = arith.andi %19, %13 : vector<1x256xi1>
    %21 = vector.broadcast %9 : i32 to vector<1x256xi32>
    %22 = arith.addi %11, %21 : vector<1x256xi32>
    %23 = arith.select %20, %22, %11 : vector<1x256xi1>, vector<1x256xi32>
    %c1_i32_8 = arith.constant 1 : i32
    %24 = vector.broadcast %c1_i32_8 : i32 to vector<1x256xi32>
    %25 = arith.cmpi sge, %23, %24 : vector<1x256xi32>
    %c14_i32 = arith.constant 14 : i32
    %26 = vector.broadcast %c14_i32 : i32 to vector<1x256xi32>
    %27 = arith.cmpi sle, %23, %26 : vector<1x256xi32>
    %c1_i32_9 = arith.constant 1 : i32
    %28 = tpu.dynamic_rotate %1 by %c1_i32_9 dim 1 : vector<8x384xf32>, i32 -> vector<8x384xf32>
    %29 = vector.extract_strided_slice %28 {offsets = [0, 0], sizes = [8, 256], strides = [1, 1]} : vector<8x384xf32> to vector<8x256xf32>
    %cst = arith.constant 0.000000e+00 : f32
    %30 = vector.broadcast %cst : f32 to vector<8x256xf32>
    %31 = vector.shape_cast %25 : vector<1x256xi1> to vector<1x256xi1>
    %32 = vector.broadcast %31 : vector<1x256xi1> to vector<8x256xi1>
    %33 = arith.select %32, %29, %30 : vector<8x256xi1>, vector<8x256xf32>
    %34 = vector.extract_strided_slice %1 {offsets = [0, 0], sizes = [8, 256], strides = [1, 1]} : vector<8x384xf32> to vector<8x256xf32>
    %c383_i32 = arith.constant 383 : i32
    %35 = tpu.dynamic_rotate %1 by %c383_i32 dim 1 : vector<8x384xf32>, i32 -> vector<8x384xf32>
    %36 = vector.extract_strided_slice %35 {offsets = [0, 0], sizes = [8, 256], strides = [1, 1]} : vector<8x384xf32> to vector<8x256xf32>
    %cst_10 = arith.constant 0.000000e+00 : f32
    %37 = vector.broadcast %cst_10 : f32 to vector<8x256xf32>
    %38 = vector.shape_cast %27 : vector<1x256xi1> to vector<1x256xi1>
    %39 = vector.broadcast %38 : vector<1x256xi1> to vector<8x256xi1>
    %40 = arith.select %39, %36, %37 : vector<8x256xi1>, vector<8x256xf32>
    %c369_i32 = arith.constant 369 : i32
    %41 = tpu.dynamic_rotate %1 by %c369_i32 dim 1 : vector<8x384xf32>, i32 -> vector<8x384xf32>
    %42 = vector.extract_strided_slice %41 {offsets = [0, 0], sizes = [8, 256], strides = [1, 1]} : vector<8x384xf32> to vector<8x256xf32>
    %cst_11 = arith.constant 0.000000e+00 : f32
    %43 = vector.broadcast %cst_11 : f32 to vector<8x256xf32>
    %44 = vector.shape_cast %25 : vector<1x256xi1> to vector<1x256xi1>
    %45 = vector.broadcast %44 : vector<1x256xi1> to vector<8x256xi1>
    %46 = arith.select %45, %42, %43 : vector<8x256xi1>, vector<8x256xf32>
    %c367_i32 = arith.constant 367 : i32
    %47 = tpu.dynamic_rotate %1 by %c367_i32 dim 1 : vector<8x384xf32>, i32 -> vector<8x384xf32>
    %48 = vector.extract_strided_slice %47 {offsets = [0, 0], sizes = [8, 256], strides = [1, 1]} : vector<8x384xf32> to vector<8x256xf32>
    %cst_12 = arith.constant 0.000000e+00 : f32
    %49 = vector.broadcast %cst_12 : f32 to vector<8x256xf32>
    %50 = vector.shape_cast %27 : vector<1x256xi1> to vector<1x256xi1>
    %51 = vector.broadcast %50 : vector<1x256xi1> to vector<8x256xi1>
    %52 = arith.select %51, %48, %49 : vector<8x256xi1>, vector<8x256xf32>
    %c353_i32 = arith.constant 353 : i32
    %53 = tpu.dynamic_rotate %1 by %c353_i32 dim 1 : vector<8x384xf32>, i32 -> vector<8x384xf32>
    %54 = vector.extract_strided_slice %53 {offsets = [0, 0], sizes = [8, 256], strides = [1, 1]} : vector<8x384xf32> to vector<8x256xf32>
    %cst_13 = arith.constant 0.000000e+00 : f32
    %55 = vector.broadcast %cst_13 : f32 to vector<8x256xf32>
    %56 = vector.shape_cast %25 : vector<1x256xi1> to vector<1x256xi1>
    %57 = vector.broadcast %56 : vector<1x256xi1> to vector<8x256xi1>
    %58 = arith.select %57, %54, %55 : vector<8x256xi1>, vector<8x256xf32>
    %c352_i32 = arith.constant 352 : i32
    %59 = tpu.dynamic_rotate %1 by %c352_i32 dim 1 : vector<8x384xf32>, i32 -> vector<8x384xf32>
    %60 = vector.extract_strided_slice %59 {offsets = [0, 0], sizes = [8, 256], strides = [1, 1]} : vector<8x384xf32> to vector<8x256xf32>
    %c351_i32 = arith.constant 351 : i32
    %61 = tpu.dynamic_rotate %1 by %c351_i32 dim 1 : vector<8x384xf32>, i32 -> vector<8x384xf32>
    %62 = vector.extract_strided_slice %61 {offsets = [0, 0], sizes = [8, 256], strides = [1, 1]} : vector<8x384xf32> to vector<8x256xf32>
    %cst_14 = arith.constant 0.000000e+00 : f32
    %63 = vector.broadcast %cst_14 : f32 to vector<8x256xf32>
    %64 = vector.shape_cast %27 : vector<1x256xi1> to vector<1x256xi1>
    %65 = vector.broadcast %64 : vector<1x256xi1> to vector<8x256xi1>
    %66 = arith.select %65, %62, %63 : vector<8x256xi1>, vector<8x256xf32>
    %67 = tpu.concatenate %33, %34, %40, %46, %3, %52, %58, %60, %66 in 0 : vector<8x256xf32>, vector<8x256xf32>, vector<8x256xf32>, vector<8x256xf32>, vector<8x256xf32>, vector<8x256xf32>, vector<8x256xf32>, vector<8x256xf32>, vector<8x256xf32> -> vector<72x256xf32>
    %c0_15 = arith.constant 0 : index
    %c0_16 = arith.constant 0 : index
    %68 = vector.load %arg2[%c0_15, %c0_16] : memref<16x72xf32, #tpu.memory_space<vmem>>, vector<16x72xf32>
    %cst_17 = arith.constant dense<0.000000e+00> : vector<16x256xf32>
    %69 = tpu.matmul %68, %67, %cst_17 {dimension_numbers = #tpu.dot_dimension_numbers<[1], [0], [0], [1], [0, 0, 1, 1], [], []>} : vector<16x72xf32>, vector<72x256xf32>, vector<16x256xf32> -> vector<16x256xf32>
    %c0_18 = arith.constant 0 : index
    %c0_19 = arith.constant 0 : index
    %70 = vector.load %arg3[%c0_18, %c0_19] : memref<16x1xf32, #tpu.memory_space<vmem>>, vector<16x1xf32>
    %71 = vector.broadcast %70 : vector<16x1xf32> to vector<16x256xf32>
    %72 = arith.addf %69, %71 : vector<16x256xf32>
    %cst_20 = arith.constant 0.000000e+00 : f32
    %73 = vector.broadcast %cst_20 : f32 to vector<16x256xf32>
    %74 = arith.cmpf oge, %72, %73 : vector<16x256xf32>
    %cst_21 = arith.constant 1.000000e-01 : f32
    %75 = vector.broadcast %cst_21 : f32 to vector<16x256xf32>
    %76 = arith.mulf %75, %72 : vector<16x256xf32>
    %77 = arith.select %74, %72, %76 : vector<16x256xi1>, vector<16x256xf32>
    %c0_22 = arith.constant 0 : index
    %c8 = arith.constant 8 : index
    %c0_23 = arith.constant 0 : index
    %78 = vector.load %arg4[%c0_22, %c8, %c0_23] : memref<1x24x256xf32, #tpu.memory_space<vmem>>, vector<1x16x256xf32>
    %79 = vector.shape_cast %78 : vector<1x16x256xf32> to vector<16x256xf32>
    %80 = vector.shape_cast %77 : vector<16x256xf32> to vector<1x16x256xf32>
    tpu.vector_store %arg4[%c0_22, %c8, %c0_23], %80 {strides = array<i32>} : memref<1x24x256xf32, #tpu.memory_space<vmem>>, vector<1x16x256xf32>,
    return
  }
  func.func @transform_0(%arg0: i32) -> (i32, i32, i32) {
    %c0_i32 = arith.constant 0 : i32
    %c0_i32_0 = arith.constant 0 : i32
    %c0_i32_1 = arith.constant 0 : i32
    return %arg0, %c0_i32, %c0_i32_0 : i32, i32, i32
  }
  func.func @transform_1(%arg0: i32) -> (i32, i32) {
    %c0_i32 = arith.constant 0 : i32
    %c0_i32_0 = arith.constant 0 : i32
    %c0_i32_1 = arith.constant 0 : i32
    return %c0_i32, %c0_i32_0 : i32, i32
  }
  func.func @transform_2(%arg0: i32) -> (i32, i32) {
    %c0_i32 = arith.constant 0 : i32
    %c0_i32_0 = arith.constant 0 : i32
    %c0_i32_1 = arith.constant 0 : i32
    return %c0_i32, %c0_i32_0 : i32, i32
  }
  func.func @transform_3(%arg0: i32) -> (i32, i32, i32) {
    %c0_i32 = arith.constant 0 : i32
    %c0_i32_0 = arith.constant 0 : i32
    %c0_i32_1 = arith.constant 0 : i32
    return %arg0, %c0_i32, %c0_i32_0 : i32, i32, i32
  }
}

</mosaic_0001>

<bundles_post_ra>
// kernel: one_conv.1
= control target key start
LH: loop header
LB: loop body
LE: loop exit
PB: predicated region body
PF: predicated region fallthrough
CT: control target
= control target key end

     0   :  { %s543_s12 = smov 0   ;;  %s684_s0 = inlined_call_operand.vmem [shape: f32[2,8,384], index: 0, kind: input, shape index: {}]   ;;  %s685_s1 = inlined_call_operand.vmem [shape: f32[16,72], index: 1, kind: input, shape index: {}]   ;;  %s686_s2 = inlined_call_operand.vmem [shape: f32[16,1], index: 2, kind: input, shape index: {}]   ;;  %s687_s3 = inlined_call_operand.vmem [shape: f32[2,24,256], index: 3, kind: output, shape index: {}]  }
   0x1 LB: > { %s437_s13 = sadd.s32 4294967295, %s512_s12   ;;  %p441_p0 = scmp.ge.s32.totalorder %s512_s12, 1  ;;  %s512_s12 = sphi %s543_s12, %s13_s12  }
   0x2   : > { %p137_p1 = scmp.lt.s32.totalorder %s512_s12, 3 }
   0x4   : > { %p138_p2 = pnand %p441_p0, %p137_p1 }
   0x5   : > { %p161_p3 = scmp.lt.s32.totalorder (!%p138_p2), %s437_s13, 1  ;;  %s514_s18 = smov (!%p138_p2), 95  }
   0x6   : > { %141 = sbr.rel (%p138_p2) target bundleno = 329 (0x149), region = 32  ;;  %s515_s19 = smov (!%p138_p2), 96  }
   0x7   : > { %s516_s20 = smov (!%p138_p2), 97   ;;  %s517_s21 = smov (!%p138_p2), 111  }
   0x8   : > { %s518_s22 = smov (!%p138_p2), 112   ;;  %s519_s23 = smov (!%p138_p2), 113  }
   0x9   : > { %s520_s24 = smov (!%p138_p2), 127   ;;  %s521_s25 = smov (!%p138_p2), 1  }
   0xb   : > { %s697_s13 = smov (!%p161_p3, %s437_s13), 1  ;;  %v180_v4 = vlaneseq  ;;  %v302_v35 = vld [vmem:[%s686_s2 + $0x8] sm:$0xff]  ;;  %v301_v36 = vld [vmem:[%s686_s2] sm:$0xff]  ;;  %v522_v37 = vmov 0   ;;  %vm313_vm12 = vcmask 588800  }
   0xc   : > { %s480_s14 = smul.u32 24, %s697_s13  ;;  %505 = vset.pattern.permute.xlu0 %v522_v37  ;;  %504 = vset.pattern.permute.xlu2 %v522_v37  ;;  %v300_v57 = vld [vmem:[%s685_s1 + $0x8] sm:$0xff]  ;;  %v299_v58 = vld [vmem:[%s685_s1] sm:$0xff] }
   0xd   : > { %v577_v6 = vand.u32 127, %v180_v4  ;;  %s481_s26 = smul.u32 48, %s697_s13 }
   0xe   : > { %s165_s17 = scalar_lea.vmem %s684_s0, %s480_s14 }
   0xf   : > { %v173_v0 = vld [vmem:[%s165_s17 + $0x10] sm:$0xff]  ;;  %v557_v1 = vld [vmem:[%s165_s17] sm:$0xff]  ;;  %v560_v2 = vld [vmem:[%s165_s17 + $0x8] sm:$0xff]  ;;  %v187_v9 = vadd.s32 128, %v577_v6  ;;  %v192_v10 = vand.u32 15, %v577_v6  ;;  %vm294_vm0 = vcmp.lt.s32.totalorder %v577_v6, 95  ;;  %s636_s6 = scalar_lea.vmem %s687_s3, %s481_s26 }
  0x10   : > { %292 = vrot.lane.b32.xlu1 %v173_v0, %s514_s18  ;;  %288 = vrot.lane.b32.xlu0 %v557_v1, %s514_s18  ;;  %v499_v3 = vpack.i.bf16 %v560_v2, %v557_v1  ;;  %vm285_vm3 = vcmp.lt.s32.totalorder %v577_v6, 96  ;;  %vm274_vm4 = vcmp.lt.s32.totalorder %v577_v6, 97  ;;  %vm263_vm7 = vcmp.lt.s32.totalorder %v577_v6, 111 }
  0x11   : > { %283 = vrot.lane.b32.xlu2 %v173_v0, %s515_s19  ;;  %v199_v12 = vand.u32 15, %v187_v9  ;;  %vm582_vm1 = vcmp.le.s32.totalorder %v192_v10, 14  ;;  %vm600_vm5 = vcmp.ge.s32.totalorder %v192_v10, 1  ;;  %vm182_vm8 = vcmp.lt.s32.totalorder %v577_v6, 112 }
  0x12   : > { %vm252_vm9 = vcmp.lt.s32.totalorder %v577_v6, 113  ;;  %vm237_vm10 = vcmp.lt.s32.totalorder %v577_v6, 127  ;;  %vm222_vm11 = vcmp.lt.s32.totalorder %v577_v6, 1 }
  0x13   : > { %vm586_vm2 = vcmp.le.s32.totalorder %v199_v12, 14  ;;  %vm604_vm6 = vcmp.ge.s32.totalorder %v199_v12, 1 }
  0x18   : > { %500 = vrot.lane.b32.xlu1 %v499_v3, %s515_s19  ;;  %290 = vrot.lane.b32.xlu0 %v560_v2, %s514_s18 }
  0x19   : > { %268 = vrot.lane.b32.xlu2 %v557_v1, %s516_s20 }
  0x20   : > { %272 = vrot.lane.b32.xlu1 %v173_v0, %s516_s20  ;;  %270 = vrot.lane.b32.xlu0 %v560_v2, %s516_s20 }
  0x21   : > { %257 = vrot.lane.b32.xlu2 %v557_v1, %s517_s21 }
  0x28   : > { %261 = vrot.lane.b32.xlu1 %v173_v0, %s517_s21  ;;  %259 = vrot.lane.b32.xlu0 %v560_v2, %s517_s21 }
  0x29   : > { %174 = vrot.lane.b32.xlu2 %v557_v1, %s518_s22 }
  0x30   : > { %178 = vrot.lane.b32.xlu1 %v173_v0, %s518_s22  ;;  %176 = vrot.lane.b32.xlu0 %v560_v2, %s518_s22 }
  0x31   : > { %246 = vrot.lane.b32.xlu2 %v557_v1, %s519_s23 }
  0x38   : > { %250 = vrot.lane.b32.xlu1 %v173_v0, %s519_s23  ;;  %248 = vrot.lane.b32.xlu0 %v560_v2, %s519_s23 }
  0x39   : > { %231 = vrot.lane.b32.xlu2 %v557_v1, %s520_s24 }
  0x40   : > { %235 = vrot.lane.b32.xlu1 %v173_v0, %s520_s24  ;;  %233 = vrot.lane.b32.xlu0 %v560_v2, %s520_s24 }
  0x41   : > { %216 = vrot.lane.b32.xlu2 %v557_v1, %s521_s25 }
  0x48   : > { %220 = vrot.lane.b32.xlu1 %v173_v0, %s521_s25  ;;  %218 = vrot.lane.b32.xlu0 %v560_v2, %s521_s25 }
  0x49   : > { %305 = vperm.xlu2 %504, %v301_v36  }
  0x50   : > { %310 = vperm.xlu0 %505, %v302_v35  }
  0x6b   : > { %v284_v5 = vpop.permute.xlu2 %283 }
  0x73   : > { %v269_v11 = vpop.permute.xlu2 %268 }
  0x7b   : > { %v258_v23 = vpop.permute.xlu2 %257 }
  0x82   : > { %v293_v7 = vpop.permute.xlu1 %292  ;;  %v289_v8 = vpop.permute.xlu0 %288 }
  0x83   : > { %v175_v30 = vpop.permute.xlu2 %174 }
  0x8a   : > { %v501_v14 = vpop.permute.xlu1 %500  ;;  %v291_v15 = vpop.permute.xlu0 %290 }
  0x8b   : > { %v503_v17 = vunpack.i.h.bf16 %v501_v14  ;;  %v502_v18 = vunpack.i.l.bf16 %v501_v14  ;;  %v296_v19 = vsel %vm294_vm0, %v289_v8, %v291_v15  ;;  %v295_v20 = vsel %vm294_vm0, %v291_v15, %v293_v7  ;;  %v247_v42 = vpop.permute.xlu2 %246 }
  0x8c   : > { %444 = vmatpush.msk.msra.mxu0 %vm582_vm1, %v296_v19  ;;  %462 = vmatpush.msk.msra.mxu2 %vm582_vm1, %v296_v19 }
  0x8d   : > { %452 = vmatpush.msk.msra.mxu1 %vm586_vm2, %v295_v20  ;;  %471 = vmatpush.msk.msra.mxu3 %vm586_vm2, %v295_v20  ;;  %v287_v21 = vsel %vm285_vm3, %v502_v18, %v503_v17  ;;  %v286_v22 = vsel %vm285_vm3, %v503_v17, %v284_v5 }
  0x8e   : > { %328 = vmatpush.msra.mxu0 %v287_v21  ;;  %463 = vmatpush.msra.mxu2 %v287_v21 }
  0x8f   : > { %351 = vmatpush.msra.mxu1 %v286_v22  ;;  %472 = vmatpush.msra.mxu3 %v286_v22 }
  0x92   : > { %v273_v25 = vpop.permute.xlu1 %272  ;;  %v271_v26 = vpop.permute.xlu0 %270 }
  0x93   : > { %v276_v28 = vsel %vm274_vm4, %v269_v11, %v271_v26  ;;  %v275_v29 = vsel %vm274_vm4, %v271_v26, %v273_v25  ;;  %v232_v47 = vpop.permute.xlu2 %231 }
  0x94   : > { %445 = vmatpush.msk.msra.mxu0 %vm600_vm5, %v276_v28  ;;  %464 = vmatpush.msk.msra.mxu2 %vm600_vm5, %v276_v28 }
  0x95   : > { %453 = vmatpush.msk.msra.mxu1 %vm604_vm6, %v275_v29  ;;  %473 = vmatpush.msk.msra.mxu3 %vm604_vm6, %v275_v29 }
  0x9a   : > { %v262_v31 = vpop.permute.xlu1 %261  ;;  %v260_v32 = vpop.permute.xlu0 %259 }
  0x9b   : > { %v265_v33 = vsel %vm263_vm7, %v258_v23, %v260_v32  ;;  %v264_v34 = vsel %vm263_vm7, %v260_v32, %v262_v31  ;;  %v217_v52 = vpop.permute.xlu2 %216 }
  0x9c   : > { %446 = vmatpush.msk.msra.mxu0 %vm582_vm1, %v265_v33  ;;  %465 = vmatpush.msk.msra.mxu2 %vm582_vm1, %v265_v33 }
  0x9d   : > { %454 = vmatpush.msk.msra.mxu1 %vm586_vm2, %v264_v34  ;;  %474 = vmatpush.msk.msra.mxu3 %vm586_vm2, %v264_v34 }
  0xa2   : > { %v179_v38 = vpop.permute.xlu1 %178  ;;  %v177_v39 = vpop.permute.xlu0 %176 }
  0xa3   : > { %v184_v40 = vsel %vm182_vm8, %v175_v30, %v177_v39  ;;  %v183_v41 = vsel %vm182_vm8, %v177_v39, %v179_v38  ;;  %v306_v59 = vpop.permute.xlu2 %305 }
  0xa4   : > { %185 = vst [vmem:[%s636_s6] sm:$0xff] %v184_v40  ;;  %331 = vmatpush.msra.mxu0 %v184_v40  ;;  %466 = vmatpush.msra.mxu2 %v184_v40 }
  0xa5   : > { %186 = vst [vmem:[%s636_s6 + $0x8] sm:$0xff] %v183_v41  ;;  %354 = vmatpush.msra.mxu1 %v183_v41  ;;  %475 = vmatpush.msra.mxu3 %v183_v41 }
  0xaa   : > { %v251_v43 = vpop.permute.xlu1 %250  ;;  %v249_v44 = vpop.permute.xlu0 %248 }
  0xab   : > { %v254_v45 = vsel %vm252_vm9, %v247_v42, %v249_v44  ;;  %v253_v46 = vsel %vm252_vm9, %v249_v44, %v251_v43 }
  0xac   : > { %447 = vmatpush.msk.msra.mxu0 %vm600_vm5, %v254_v45  ;;  %467 = vmatpush.msk.msra.mxu2 %vm600_vm5, %v254_v45 }
  0xad   : > { %455 = vmatpush.msk.msra.mxu1 %vm604_vm6, %v253_v46  ;;  %476 = vmatpush.msk.msra.mxu3 %vm604_vm6, %v253_v46 }
  0xb2   : > { %v236_v48 = vpop.permute.xlu1 %235  ;;  %v234_v49 = vpop.permute.xlu0 %233 }
  0xb3   : > { %v239_v50 = vsel %vm237_vm10, %v232_v47, %v234_v49  ;;  %v238_v51 = vsel %vm237_vm10, %v234_v49, %v236_v48 }
  0xb4   : > { %448 = vmatpush.msk.msra.mxu0 %vm582_vm1, %v239_v50  ;;  %468 = vmatpush.msk.msra.mxu2 %vm582_vm1, %v239_v50 }
  0xb5   : > { %456 = vmatpush.msk.msra.mxu1 %vm586_vm2, %v238_v51  ;;  %477 = vmatpush.msk.msra.mxu3 %vm586_vm2, %v238_v51 }
  0xb6   : > { %334 = vmatpush.msra.mxu0 %v557_v1  ;;  %469 = vmatpush.msra.mxu2 %v557_v1 }
  0xb7   : > { %357 = vmatpush.msra.mxu1 %v560_v2  ;;  %478 = vmatpush.msra.mxu3 %v560_v2 }
  0xba   : > { %v221_v53 = vpop.permute.xlu1 %220  ;;  %v219_v54 = vpop.permute.xlu0 %218 }
  0xbb   : > { %v224_v55 = vsel %vm222_vm11, %v221_v53, %v217_v52  ;;  %v223_v56 = vsel %vm222_vm11, %v217_v52, %v219_v54 }
  0xbc   : > { %449 = vmatpush.msk.msra.mxu0 %vm600_vm5, %v224_v55  ;;  %470 = vmatpush.msk.msra.mxu2 %vm600_vm5, %v224_v55 }
  0xbd   : > { %457 = vmatpush.msk.msra.mxu1 %vm604_vm6, %v223_v56  ;;  %479 = vmatpush.msk.msra.mxu3 %vm604_vm6, %v223_v56 }
  0xbe   : > { %451 = vmatmul.msk.f32.vlgmr.msra.gmra.mxu2 %vm313_vm12, %v300_v57  ;;  %459 = vmatmul.msk.f32.vlgmr.msra.gmra.mxu3 %vm313_vm12, %v300_v57 }
  0xbf   : > { %450 = vmatmul.msk.f32.vlgmr.msra.gmra.mxu0 %vm313_vm12, %v299_v58  ;;  %458 = vmatmul.msk.f32.vlgmr.msra.gmra.mxu1 %vm313_vm12, %v299_v58 }
  0xc2   : > { %v311_v2 = vpop.permute.xlu0 %310 }
 0x13c   : > { %v337_v60 = vpop.f32.mrf.mxu0  ;;  %v360_v61 = vpop.f32.mrf.mxu1 }
 0x13d   : > { %v338_v62 = vadd.f32 %v337_v60, %v306_v59  ;;  %v361_v63 = vadd.f32 %v360_v61, %v306_v59 }
 0x13f   : > { %vm366_vm13 = vcmp.ge.f32.partialorder %v338_v62, 0.0  ;;  %v370_v0 = vmul.f32 0.1, %v338_v62  ;;  %vm367_vm14 = vcmp.ge.f32.partialorder %v361_v63, 0.0  ;;  %v371_v1 = vmul.f32 0.1, %v361_v63 }
 0x141   : > { %v374_v3 = vsel %vm366_vm13, %v338_v62, %v370_v0  ;;  %v375_v4 = vsel %vm367_vm14, %v361_v63, %v371_v1  ;;  %v340_v5 = vpop.f32.mrf.mxu2  ;;  %v363_v6 = vpop.f32.mrf.mxu3 }
 0x142   : > { %378 = vst [vmem:[%s636_s6 + $0x10] sm:$0xff] %v374_v3  ;;  %v341_v7 = vadd.f32 %v340_v5, %v311_v2  ;;  %v364_v8 = vadd.f32 %v363_v6, %v311_v2 }
 0x143   : > { %379 = vst [vmem:[%s636_s6 + $0x18] sm:$0xff] %v375_v4 }
 0x144   : > { %vm368_vm15 = vcmp.ge.f32.partialorder %v341_v7, 0.0  ;;  %vm369_vm0 = vcmp.ge.f32.partialorder %v364_v8, 0.0  ;;  %v372_v9 = vmul.f32 0.1, %v341_v7  ;;  %v373_v10 = vmul.f32 0.1, %v364_v8 }
 0x146   : > { %v376_v11 = vsel %vm368_vm15, %v341_v7, %v372_v9  ;;  %v377_v12 = vsel %vm369_vm0, %v364_v8, %v373_v10 }
 0x147   : > { %380 = vst [vmem:[%s636_s6 + $0x20] sm:$0xff] %v376_v11 }
 0x148   : > { %381 = vst [vmem:[%s636_s6 + $0x28] sm:$0xff] %v377_v12 }
 0x149 PF: > { %s13_s12 = sadd.s32 1, %s512_s12  }
 0x14a   : > { %p10_p4 = scmp.ge.s32.totalorder %s13_s12, 4  }
 0x14c   :  { %12 = sbr.rel (!%p10_p4) target bundleno = 1 (0x1), region = 62 }

</bundles_post_ra>
